<compile_context>
chip_gen: v7x
topology: tpu7x:2x2x1
jax: 0.10.0
libtpu: 0.0.40
codegen_flags: <defaults>
</compile_context>

<pallas_src>
import functools

import jax
import jax.numpy as jnp
import numpy as np
from jax.experimental import pallas as pl
from jax.experimental.pallas import tpu as pltpu


def _euc_loss_beta_kernel(y_ref, yp_ref, out_ref, *, n_rot, beta):
    # y_ref, yp_ref: (B, D) f32 in VMEM.  out_ref: (1, 3) f32 in SMEM.
    B, D = y_ref.shape
    n_t = D - n_rot

    # Elementwise |pred - target| — one VPU pass over the whole tile.
    diff = jnp.abs(yp_ref[...] - y_ref[...])                     # (B, D)

    # Collapse the batch (sublane) axis once; everything after runs on (1, D).
    col_sums = jnp.sum(diff, axis=0, keepdims=True)              # (1, D)

    # Lane mask selecting the last n_rot (rotation / quaternion) columns.
    col = jax.lax.broadcasted_iota(jnp.int32, (1, D), dimension=1)
    rot_mask = col >= n_t

    sum_all = jnp.sum(col_sums)                                  # lane reduce
    sum_rot = jnp.sum(jnp.where(rot_mask, col_sums, 0.0))        # lane reduce
    sum_trn = sum_all - sum_rot                                  # translation

    loss_t = sum_trn * (1.0 / float(B * n_t))
    loss_r = sum_rot * (1.0 / float(B * n_rot))
    loss = loss_t + beta * loss_r

    out_ref[0, 0] = loss
    out_ref[0, 1] = loss_t
    out_ref[0, 2] = loss_r


def euc_loss_beta(y, y_pred, beta=500.0):
    """Pallas equivalent of EucLossBeta(beta).forward(y, y_pred)."""
    assert y.shape == y_pred.shape and y.ndim == 2 and y.shape[1] > 4
    kernel = functools.partial(_euc_loss_beta_kernel, n_rot=4, beta=float(beta))
    out = pl.pallas_call(
        kernel,
        out_shape=jax.ShapeDtypeStruct((1, 3), jnp.float32),
        in_specs=[pl.BlockSpec(memory_space=pltpu.MemorySpace.VMEM),
                  pl.BlockSpec(memory_space=pltpu.MemorySpace.VMEM)],
        out_specs=pl.BlockSpec(memory_space=pltpu.MemorySpace.SMEM),
    )(y.astype(jnp.float32), y_pred.astype(jnp.float32))
    # torch returns (loss_tensor, loss_t.item(), loss_r.item()); here all three
    # come back as JAX scalars — host-side .item() conversion is the caller's.
    return out[0, 0], out[0, 1], out[0, 2]


def euc_loss_beta_ref(y, y_pred, beta=500.0):
    loss_t = jnp.mean(jnp.abs(y_pred[:, :-4] - y[:, :-4]))
    loss_r = jnp.mean(jnp.abs(y_pred[:, -4:] - y[:, -4:]))
    return loss_t + beta * loss_r, loss_t, loss_r


if __name__ == "__main__":
    B, D = 8, 7   # pose regression target: 3 translation + 4 quaternion comps
    key = jax.random.PRNGKey(0)
    ky, kp = jax.random.split(key)
    y = jax.random.normal(ky, (B, D), jnp.float32)
    y_pred = jax.random.normal(kp, (B, D), jnp.float32)

    loss, loss_t, loss_r = euc_loss_beta(y, y_pred, beta=500.0)
    loss = jax.block_until_ready(loss)

    ref_loss, ref_t, ref_r = euc_loss_beta_ref(y, y_pred, beta=500.0)
    np.testing.assert_allclose(np.asarray(loss), np.asarray(ref_loss),
                               rtol=1e-5, atol=1e-5)
    np.testing.assert_allclose(np.asarray(loss_t), np.asarray(ref_t),
                               rtol=1e-6, atol=1e-6)
    np.testing.assert_allclose(np.asarray(loss_r), np.asarray(ref_r),
                               rtol=1e-6, atol=1e-6)

    print("KERNEL_OK")
</pallas_src>

<mosaic_0001>
module attributes {stable_mosaic.version = 11 : i64} {
  func.func @_euc_loss_beta_kernel(%arg0: memref<8x7xf32, #tpu.memory_space<vmem>>, %arg1: memref<8x7xf32, #tpu.memory_space<vmem>>, %arg2: memref<1x3xf32, #tpu.memory_space<smem>>) attributes {dimension_semantics = [], scalar_prefetch = 0 : i64, scratch_operands = 0 : i64, tpu.core_type = #tpu.core_type<tc>} {
    %c0 = arith.constant 0 : index
    %c0_0 = arith.constant 0 : index
    %0 = vector.load %arg1[%c0, %c0_0] : memref<8x7xf32, #tpu.memory_space<vmem>>, vector<8x7xf32>
    %c0_1 = arith.constant 0 : index
    %c0_2 = arith.constant 0 : index
    %1 = vector.load %arg0[%c0_1, %c0_2] : memref<8x7xf32, #tpu.memory_space<vmem>>, vector<8x7xf32>
    %2 = arith.subf %0, %1 : vector<8x7xf32>
    %3 = math.absf %2 : vector<8x7xf32>
    %cst = arith.constant dense<0.000000e+00> : vector<7xf32>
    %4 = vector.multi_reduction <add>, %3, %cst [0] : vector<8x7xf32> to vector<7xf32>
    %5 = vector.shape_cast %4 : vector<7xf32> to vector<1x7xf32>
    %6 = tpu.iota {dimensions = array<i32: 1>} : vector<1x7xi32>
    %c3_i32 = arith.constant 3 : i32
    %7 = vector.broadcast %c3_i32 : i32 to vector<1x7xi32>
    %8 = arith.cmpi sge, %6, %7 : vector<1x7xi32>
    %9 = vector.shape_cast %5 : vector<1x7xf32> to vector<1x1x7xf32>
    %cst_3 = arith.constant dense<0.000000e+00> : vector<1xf32>
    %10 = vector.multi_reduction <add>, %9, %cst_3 [1, 2] : vector<1x1x7xf32> to vector<1xf32>
    %11 = vector.shape_cast %10 : vector<1xf32> to vector<1x1x1xf32>
    %12 = vector.extract %11[0, 0, 0] : f32 from vector<1x1x1xf32>
    %cst_4 = arith.constant 0.000000e+00 : f32
    %13 = vector.broadcast %cst_4 : f32 to vector<1x7xf32>
    %14 = arith.select %8, %5, %13 : vector<1x7xi1>, vector<1x7xf32>
    %15 = vector.shape_cast %14 : vector<1x7xf32> to vector<1x1x7xf32>
    %cst_5 = arith.constant dense<0.000000e+00> : vector<1xf32>
    %16 = vector.multi_reduction <add>, %15, %cst_5 [1, 2] : vector<1x1x7xf32> to vector<1xf32>
    %17 = vector.shape_cast %16 : vector<1xf32> to vector<1x1x1xf32>
    %18 = vector.extract %17[0, 0, 0] : f32 from vector<1x1x1xf32>
    %19 = arith.subf %12, %18 : f32
    %cst_6 = arith.constant 0.0416666679 : f32
    %20 = arith.mulf %19, %cst_6 : f32
    %cst_7 = arith.constant 3.125000e-02 : f32
    %21 = arith.mulf %18, %cst_7 : f32
    %cst_8 = arith.constant 5.000000e+02 : f32
    %22 = arith.mulf %cst_8, %21 : f32
    %23 = arith.addf %20, %22 : f32
    %c0_9 = arith.constant 0 : index
    %c0_10 = arith.constant 0 : index
    %24 = memref.load %arg2[%c0_9, %c0_10] : memref<1x3xf32, #tpu.memory_space<smem>>
    memref.store %23, %arg2[%c0_9, %c0_10] : memref<1x3xf32, #tpu.memory_space<smem>>
    %c0_11 = arith.constant 0 : index
    %c1 = arith.constant 1 : index
    %25 = memref.load %arg2[%c0_11, %c1] : memref<1x3xf32, #tpu.memory_space<smem>>
    memref.store %20, %arg2[%c0_11, %c1] : memref<1x3xf32, #tpu.memory_space<smem>>
    %c0_12 = arith.constant 0 : index
    %c2 = arith.constant 2 : index
    %26 = memref.load %arg2[%c0_12, %c2] : memref<1x3xf32, #tpu.memory_space<smem>>
    memref.store %21, %arg2[%c0_12, %c2] : memref<1x3xf32, #tpu.memory_space<smem>>
    return
  }
}

</mosaic_0001>

<bundles_post_ra>
// kernel: tpu_custom_call.1
= control target key start
LH: loop header
LB: loop body
LE: loop exit
PB: predicated region body
PF: predicated region fallthrough
CT: control target
= control target key end

     0   :  { %7 = vsyncpa [#allocation3], 0  ;;  %s220_s0 = inlined_call_operand.hbm [shape: f32[8,7], index: 0, kind: input, shape index: {}]   ;;  %s221_s1 = inlined_call_operand.hbm [shape: f32[8,7], index: 1, kind: input, shape index: {}]   ;;  %s222_s2 = inlined_call_operand.hbm [shape: f32[1,3], index: 2, kind: output, shape index: {}]  }
   0x1   :  { %8 = vsyncpa [#allocation6], 0 }
   0x2   :  { %9 = vsyncpa [#allocation4], 0  ;;  %s166_s9 = smov [#allocation2]   ;;  %s167_s11 = smov [#allocation5]  }
   0x3   :  { %s16_s10 = sshll.u32 %s166_s9, 4  ;;  %s26_s12 = sshll.u32 %s167_s11, 4  ;;  %s17_s10 = int_to_ptr.vmem [resolvable:$true] %s16_s10  ;;  %s27_s12 = int_to_ptr.vmem [resolvable:$true] %s26_s12 }
   0x4   :  { %s106_s15 = scalar_lea.hbm %s220_s0, 128 }
   0x5   :  { %p107_p0 = scmp.ne.s32.totalorder %s220_s0, %s106_s15  ;;  %p110_p1 = scmp.lt.u32.totalorder %s106_s15, %s220_s0 }
   0x7   :  { %p112_p2 = pnand %p110_p1, %p107_p0 }
   0x9   :  { %115 = shalt.err (!%p112_p2)
}
   0xa   :  { %s116_s20 = scalar_lea.vmem %s17_s10, 128  ;;  %p121_p4 = scmp.lt.s32.totalorder %s17_s10, %s17_s10 }
   0xb   :  { %p117_p3 = scmp.ne.s32.totalorder %s17_s10, %s116_s20  ;;  %p122_p5 = scmp.lt.s32.totalorder %s116_s20, %s116_s20 }
   0xd   :  { %p123_p6 = por %p122_p5, %p121_p4 }
   0xf   :  { %p124_p7 = pnand %p123_p6, %p117_p3 }
  0x11   :  { %127 = shalt.err (!%p124_p7)
}
  0x12   :  { %19 = dma.hbm_to_vmem [thread:$0]  %s220_s0, 128, %s17_s10, [#allocation3]  }
  0x13   :  { %s128_s25 = scalar_lea.hbm %s221_s1, 128 }
  0x14   :  { %p129_p8 = scmp.ne.s32.totalorder %s221_s1, %s128_s25  ;;  %p132_p9 = scmp.lt.u32.totalorder %s128_s25, %s221_s1 }
  0x16   :  { %p134_p10 = pnand %p132_p9, %p129_p8 }
  0x18   :  { %137 = shalt.err (!%p134_p10)
}
  0x19   :  { %s138_s30 = scalar_lea.vmem %s27_s12, 128  ;;  %p143_p12 = scmp.lt.s32.totalorder %s27_s12, %s27_s12 }
  0x1a   :  { %p139_p11 = scmp.ne.s32.totalorder %s27_s12, %s138_s30  ;;  %p144_p13 = scmp.lt.s32.totalorder %s138_s30, %s138_s30 }
  0x1c   :  { %p145_p0 = por %p144_p13, %p143_p12 }
  0x1e   :  { %p146_p1 = pnand %p145_p0, %p139_p11 }
  0x20   :  { %149 = shalt.err (!%p146_p1)
}
  0x21   :  { %29 = dma.hbm_to_vmem [thread:$0]  %s221_s1, 128, %s27_s12, [#allocation6]  }
  0x22   :  { %160 = dma.done.wait [#allocation3], 128  }
  0x23   :  { %161 = vsyncadd [#allocation3], 4294967168 }
  0x24   :  { %162 = dma.done.wait [#allocation6], 128  }
  0x25   :  { %163 = vsyncadd [#allocation6], 4294967168  ;;  %v36_v0 = vld [vmem:[#allocation5] sm:$0xff]  ;;  %v37_v1 = vld [vmem:[#allocation2] sm:$0xff]  ;;  %vm40_vm0 = vcmask 56320   ;;  %v48_v6 = vlaneseq  ;;  %vm51_vm1 = vcmask 49152  }
  0x26   :  { %v38_v2 = vsub.f32 %v36_v0, %v37_v1  ;;  %s150_s12 = scalar_lea.hbm %s222_s2, 16 }
  0x27   :  { %v49_v9 = vand.u32 127, %v48_v6  ;;  %p151_p2 = scmp.ne.s32.totalorder %s222_s2, %s150_s12  ;;  %p154_p3 = scmp.lt.u32.totalorder %s150_s12, %s222_s2 }
  0x28   :  { %v39_v3 = vand.u32 2147483647, %v38_v2 }
  0x29   :  { %vm50_vm2 = vcmp.ge.s32.totalorder %v49_v9, 3  ;;  %p156_p4 = pnand %p154_p3, %p151_p2 }
  0x2a   :  { %v41_v4 = vsel %vm40_vm0, %v39_v3, 0.0 }
  0x2b   :  { %v42_v5 = vrot.slane %v41_v4, 4 }
  0x2d   :  { %v43_v7 = vadd.f32 %v42_v5, %v41_v4 }
  0x2f   :  { %v44_v8 = vrot.slane %v43_v7, 2 }
  0x31   :  { %v45_v10 = vadd.f32 %v44_v8, %v43_v7 }
  0x33   :  { %v46_v11 = vrot.slane %v45_v10, 1 }
  0x35   :  { %v47_v12 = vadd.f32 %v46_v11, %v45_v10 }
  0x37   :  { %v52_v13 = vsel %vm51_vm1, %v47_v12, 0.0  ;;  %v62_v14 = vsel %vm50_vm2, %v47_v12, 0.0 }
  0x38   :  { %53 = vadd.xlane.f32.xlu0 %v52_v13  ;;  %v63_v15 = vsel %vm51_vm1, %v62_v14, 0.0 }
  0x3c   :  { %64 = vadd.xlane.f32.xlu0 %v63_v15 }
  0xc5   :  { %v54_v16 = vpop.xlane.xlu0 %53 }
  0xc6   :  { %v55_v17 = vrot.slane %v54_v16, 4 }
  0xc8   :  { %v56_v18 = vadd.f32 %v55_v17, %v54_v16 }
  0xc9   :  { %v65_v19 = vpop.xlane.xlu0 %64 }
  0xca   :  { %v57_v20 = vrot.slane %v56_v18, 2  ;;  %v66_v21 = vrot.slane %v65_v19, 4 }
  0xcc   :  { %v67_v22 = vadd.f32 %v66_v21, %v65_v19  ;;  %v58_v23 = vadd.f32 %v57_v20, %v56_v18 }
  0xce   :  { %v68_v24 = vrot.slane %v67_v22, 2  ;;  %v59_v25 = vrot.slane %v58_v23, 1 }
  0xd0   :  { %v69_v26 = vadd.f32 %v68_v24, %v67_v22  ;;  %v60_v27 = vadd.f32 %v59_v25, %v58_v23 }
  0xd2   :  { %99 = vpush %v60_v27  ;;  %v70_v28 = vrot.slane %v69_v26, 1 }
  0xd4   :  { %v71_v29 = vadd.f32 %v70_v28, %v69_v26 }
  0xd6   :  { %101 = vpush %v71_v29 }
 0x103   :  { %s100_s1 = spop %99 }
 0x107   :  { %s102_s4 = spop %101 }
 0x108   :  { %s73_s5 = ssub.f32 %s100_s1, %s102_s4  ;;  %s75_s6 = smul.f32 0.03125, %s102_s4 }
 0x10a   :  { %s74_s7 = smul.f32 0.041666668, %s73_s5  ;;  %83 = sst [smem:[#allocation7 + $0x2]] %s75_s6 }
 0x10b   :  { %s76_s8 = smul.f32 500.0, %s75_s6 }
 0x10c   :  { %81 = sst [smem:[#allocation7 + $0x1]] %s74_s7 }
 0x10d   :  { %s77_s9 = sadd.f32 %s76_s8, %s74_s7 }
 0x10f   :  { %79 = sst [smem:[#allocation7]] %s77_s9 }
 0x110   :  { %159 = shalt.err (!%p156_p4)
}
 0x111   :  { %s168_s17 = smov [#allocation7]  }
 0x112   :  { %91 = dma.smem_to_hbm %s168_s17, 16, %s222_s2, [#allocation4]  }
 0x113   :  { %164 = dma.done.wait [#allocation4], 16  }
 0x114   :  { %165 = vsyncadd [#allocation4], 4294967280 }
 0x115   :  { %95 = sfence }
 0x116   :  { %96 = vsyncpa [#allocation3], 1 }
 0x117   :  { %97 = vsyncpa [#allocation6], 1 }
 0x118   :  { %98 = vsyncpa [#allocation4], 1 }

</bundles_post_ra>
